<compile_context>
chip_gen: v7x
topology: tpu7x:2x2x1
jax: 0.10.0
libtpu: 0.0.40
codegen_flags: <defaults>
</compile_context>

<pallas_src>
import functools

import jax
import jax.numpy as jnp
from jax import lax
from jax.experimental import pallas as pl
from jax.experimental.pallas import tpu as pltpu


# ----------------------------------------------------------------------------
# Hardware query helpers
# ----------------------------------------------------------------------------
def _vmem_capacity_bytes():
    try:
        cap = getattr(pltpu.get_tpu_info(), "vmem_capacity_bytes", None)
        if cap:
            return int(cap)
    except Exception:
        pass
    return 64 << 20  # conservative default (v7x-sized VMEM)


def _choose_row_tile(n_rows, row_len, cgk, og, slab_elems, budget_bytes):
    """Output rows per grid step.

    Prefer the whole image (one big lane-dense store per (n, g)); split only
    when the per-step working set would bust the VMEM budget.  Split tiles
    must divide n_rows and keep th*row_len a multiple of 128 so the output
    block stays lane-aligned.
    """
    def step_bytes(th):
        m = th * row_len
        return 4 * (2 * cgk * slab_elems      # resident input slab (2 buffers)
                    + 2 * og * m              # output blocks (2 buffers)
                    + (og + cgk) * m)         # accumulator + per-tap patch

    if step_bytes(n_rows) <= budget_bytes:
        return n_rows, 1
    for th in range(n_rows - 1, 0, -1):
        if (n_rows % th == 0 and (th * row_len) % 128 == 0
                and step_bytes(th) <= budget_bytes):
            return th, n_rows // th
    # TODO(synk): halo-tile the input slab itself (H direction) for images /
    # lwe_dim too large for a fully resident per-(n, g) slab.
    return n_rows, 1


# ----------------------------------------------------------------------------
# Pallas kernel: per (image, group, row-tile) step, sum of per-tap matmuls.
# ----------------------------------------------------------------------------
def _conv_tap_gemm_kernel(x_ref, w_ref, b_ref, o_ref, *,
                          tap_offsets, m_tile, n_row_tiles):
    """
    x_ref : (1, 1, Cg, slab)   padded input, fused (H, W, L) minor axis,
                               VMEM-resident across the row-tile grid axis
    w_ref : (1, T, og, Cg)     per-tap weights (T = kh*kw), VMEM-resident
    b_ref : (1, og, 1)
    o_ref : (1, 1, og, m_tile) m_tile = rows_per_tile * Wp * L  (lane axis)
    """
    og = o_ref.shape[2]
    if n_row_tiles == 1:
        base = 0                                              # static offsets
    else:
        base = pl.multiple_of(pl.program_id(2) * m_tile, 128)

    acc = jnp.zeros((og, m_tile), jnp.float32)
    for t, off in enumerate(tap_offsets):                     # static unroll
        patch = x_ref[0, 0, :, pl.ds(base + off, m_tile)]     # (Cg, m_tile)
        acc = acc + jnp.dot(w_ref[0, t, :, :], patch,
                            preferred_element_type=jnp.float32)
    o_ref[0, 0, :, :] = (acc + b_ref[0, :, :]).astype(o_ref.dtype)


def _conv_gemm(x4, w4, b3, *, row_len, n_rows, tap_offsets):
    """x4: (N, G, Cg, slab), w4: (G, T, og, Cg), b3: (G, og, 1)
       -> (N, G, og, n_rows*row_len) float32."""
    n, g, cgk, slab = x4.shape
    _, t_taps, og, _ = w4.shape

    cap = _vmem_capacity_bytes()
    th, n_row_tiles = _choose_row_tile(n_rows, row_len, cgk, og, slab,
                                       int(cap * 0.6))
    m_tile = th * row_len

    need = 4 * (2 * cgk * slab + 2 * t_taps * og * cgk
                + 2 * og * m_tile + (og + cgk) * m_tile)
    vmem_limit = int(min(max(2 * need + (8 << 20), 32 << 20), int(cap * 0.85)))

    kernel = functools.partial(
        _conv_tap_gemm_kernel,
        tap_offsets=tuple(int(o) for o in tap_offsets),
        m_tile=m_tile,
        n_row_tiles=n_row_tiles,
    )

    # grid total is N*G*row_tiles; for v7x both TensorCores get work as long
    # as this is >= 2 (N=2 in the tests keeps it balanced).
    return pl.pallas_call(
        kernel,
        out_shape=jax.ShapeDtypeStruct((n, g, og, n_rows * row_len),
                                       jnp.float32),
        grid_spec=pltpu.PrefetchScalarGridSpec(
            num_scalar_prefetch=0,
            grid=(n, g, n_row_tiles),
            in_specs=[
                # padded input slab: resident across the row-tile axis
                pl.BlockSpec((1, 1, cgk, slab), lambda ni, gi, ri: (ni, gi, 0, 0)),
                # per-tap weights for this group: tiny, VMEM-resident
                pl.BlockSpec((1, t_taps, og, cgk), lambda ni, gi, ri: (gi, 0, 0, 0)),
                # bias column for this group
                pl.BlockSpec((1, og, 1), lambda ni, gi, ri: (gi, 0, 0)),
            ],
            out_specs=pl.BlockSpec((1, 1, og, m_tile),
                                   lambda ni, gi, ri: (ni, gi, 0, ri)),
        ),
        compiler_params=pltpu.CompilerParams(
            dimension_semantics=("parallel", "parallel", "arbitrary"),
            vmem_limit_bytes=vmem_limit,
        ),
    )(x4, w4, b3)


# ----------------------------------------------------------------------------
# Conv2d wrapper
# ----------------------------------------------------------------------------
@functools.partial(jax.jit,
                   static_argnames=("stride", "padding", "dilation", "groups"))
def conv2d_forward(x, weight, bias, stride, padding, dilation, groups):
    """
    x      : (N, C, H, W, L) float32
    weight : (O, C // groups, kh, kw) float32
    bias   : (O,) float32 or None
    returns: (N, O, H_out, W_out, L) float32
    """
    n, c, h, w, L = x.shape
    o, cg, kh, kw = weight.shape
    sh, sw = stride
    ph, pw = padding
    dh, dw = dilation
    assert c % groups == 0 and o % groups == 0 and cg == c // groups
    og = o // groups

    ho = (h + 2 * ph - dh * (kh - 1) - 1) // sh + 1
    wo = (w + 2 * pw - dw * (kw - 1) - 1) // sw + 1

    x = x.astype(jnp.float32)
    w32 = weight.astype(jnp.float32)
    # TODO(synk): in true TFHE the bias is only added to the LWE "b" component;
    # here (plaintext float emulation) it is added to every lwe slice.
    b3 = (bias.astype(jnp.float32) if bias is not None
          else jnp.zeros((o,), jnp.float32)).reshape(groups, og, 1)

    if (sh, sw) == (1, 1):
        # ---- fused path: in-kernel patch extraction from a resident slab ----
        hp, wp = h + 2 * ph, w + 2 * pw
        row_len = wp * L
        # extra bottom rows so right-most taps of the last output row never
        # read past the end of the fused (H, W, L) slab
        extra = (-(-((kw - 1) * dw) // wp)) if kw > 1 else 0
        xp = jnp.pad(x, ((0, 0), (0, 0), (ph, ph + extra), (pw, pw), (0, 0)))
        x4 = xp.reshape(n, groups, cg, (hp + extra) * row_len)
        w4 = (w32.reshape(groups, og, cg, kh, kw)
                 .transpose(0, 3, 4, 1, 2)
                 .reshape(groups, kh * kw, og, cg))
        tap_offsets = [ti * dh * row_len + tj * dw * L
                       for ti in range(kh) for tj in range(kw)]
        out = _conv_gemm(x4, w4, b3, row_len=row_len, n_rows=ho,
                         tap_offsets=tap_offsets)
        # (N, G, og, Ho*Wp*L) -> (N, O, Ho, Wp, L) is a free reshape; only the
        # padded-width tail [Wo:Wp) has to be trimmed.
        y = out.reshape(n, o, ho, wp, L)
        return y[:, :, :, :wo, :] if wo != wp else y

    # ---- strided fallback: per-tap gather (im2col) in XLA, same kernel ----
    # TODO(synk): fold strides into the fused path (strided in-kernel slices)
    # so this kh*kw-times-larger intermediate disappears too.
    xp = jnp.pad(x, ((0, 0), (0, 0), (ph, ph), (pw, pw), (0, 0)))
    taps = [xp[:, :, ti * dh: ti * dh + (ho - 1) * sh + 1: sh,
                     tj * dw: tj * dw + (wo - 1) * sw + 1: sw, :]
            for ti in range(kh) for tj in range(kw)]
    pat = jnp.stack(taps, axis=2)                    # (N, C, kh*kw, Ho, Wo, L)
    m = ho * wo * L
    x4 = pat.reshape(n, groups, cg * kh * kw, m)     # K = (c, ti, tj) major
    w4 = w32.reshape(groups, 1, og, cg * kh * kw)    # same K ordering
    out = _conv_gemm(x4, w4, b3, row_len=m, n_rows=1, tap_offsets=[0])
    return out.reshape(n, o, ho, wo, L)


# ----------------------------------------------------------------------------
# Pure-JAX reference for verification.
# ----------------------------------------------------------------------------
def conv2d_reference(x, weight, bias, stride, padding, dilation, groups):
    n, c, h, w, L = x.shape
    x_nl = jnp.transpose(x, (0, 4, 1, 2, 3)).reshape(n * L, c, h, w)
    y = lax.conv_general_dilated(
        x_nl, weight, window_strides=stride,
        padding=[(padding[0], padding[0]), (padding[1], padding[1])],
        rhs_dilation=dilation, feature_group_count=groups,
        dimension_numbers=("NCHW", "OIHW", "NCHW"),
        precision=lax.Precision.HIGHEST)
    if bias is not None:
        y = y + bias[None, :, None, None]
    o, ho, wo = y.shape[1:]
    y = y.reshape(n, L, o, ho, wo)
    return jnp.transpose(y, (0, 2, 3, 4, 1))  # (N, O, Ho, Wo, L)


if __name__ == "__main__":
    key = jax.random.PRNGKey(0)

    def run_case(idx, in_ch, out_ch, ksize, stride, padding, dilation, groups,
                 N=2, H=16, W=16, L=4):
        kk = jax.random.fold_in(key, idx)
        k_x, k_w, k_b = jax.random.split(kk, 3)
        kh, kw = ksize
        x = jax.random.normal(k_x, (N, in_ch, H, W, L), jnp.float32)
        wgt = jax.random.normal(k_w, (out_ch, in_ch // groups, kh, kw),
                                jnp.float32)
        b = jax.random.normal(k_b, (out_ch,), jnp.float32)
        y = jax.block_until_ready(
            conv2d_forward(x, wgt, b, stride, padding, dilation, groups))
        y_ref = conv2d_reference(x, wgt, b, stride, padding, dilation, groups)
        assert y.shape == y_ref.shape, (idx, y.shape, y_ref.shape)
        assert jnp.allclose(y, y_ref, atol=1e-4, rtol=1e-4), \
            f"case {idx}: max err {jnp.max(jnp.abs(y - y_ref))}"

    # Module-default config (fused stride-1 path, lane-dense kernel).
    run_case(0, 4, 8, (3, 3), (1, 1), (1, 1), (1, 1), 1)
    # Grouped conv (fused path, group grid axis, no block-diagonal weight).
    run_case(1, 4, 8, (3, 3), (1, 1), (0, 0), (1, 1), 2)
    # Dilated conv (fused path, static tap offsets).
    run_case(2, 4, 8, (3, 3), (1, 1), (2, 2), (2, 2), 1)
    # Strided conv (XLA per-tap gather fallback into the same kernel).
    run_case(3, 4, 8, (3, 3), (2, 2), (1, 1), (1, 1), 1)

    print("KERNEL_OK")
</pallas_src>

<mosaic_0001>
module attributes {stable_mosaic.version = 11 : i64} {
  func.func @_conv_tap_gemm_kernel(%arg0: i32, %arg1: i32, %arg2: i32, %arg3: memref<1x1x4x1368xf32, #tpu.memory_space<vmem>>, %arg4: memref<1x9x8x4xf32, #tpu.memory_space<vmem>>, %arg5: memref<1x8x1xf32, #tpu.memory_space<vmem>>, %arg6: memref<1x1x8x1152xf32, #tpu.memory_space<vmem>>) attributes {dimension_semantics = [#tpu.dimension_semantics<parallel>, #tpu.dimension_semantics<parallel>, #tpu.dimension_semantics<arbitrary>], iteration_bounds = array<i64: 2, 1, 1>, scalar_prefetch = 0 : i64, scratch_operands = 0 : i64, tpu.core_type = #tpu.core_type<tc>, window_params = [{transform_indices = @transform_0, window_bounds = array<i64: 1, 1, 4, 1368>}, {transform_indices = @transform_1, window_bounds = array<i64: 1, 9, 8, 4>}, {transform_indices = @transform_2, window_bounds = array<i64: 1, 8, 1>}, {transform_indices = @transform_3, window_bounds = array<i64: 1, 1, 8, 1152>}]} {
    %cst = arith.constant 0.000000e+00 : f32
    %0 = vector.broadcast %cst : f32 to vector<8x1152xf32>
    %c0 = arith.constant 0 : index
    %c0_0 = arith.constant 0 : index
    %c0_1 = arith.constant 0 : index
    %c0_2 = arith.constant 0 : index
    %1 = vector.load %arg3[%c0, %c0_0, %c0_1, %c0_2] : memref<1x1x4x1368xf32, #tpu.memory_space<vmem>>, vector<1x1x4x1152xf32>
    %2 = vector.shape_cast %1 : vector<1x1x4x1152xf32> to vector<4x1152xf32>
    %c0_3 = arith.constant 0 : index
    %c0_4 = arith.constant 0 : index
    %c0_5 = arith.constant 0 : index
    %c0_6 = arith.constant 0 : index
    %3 = vector.load %arg4[%c0_3, %c0_4, %c0_5, %c0_6] : memref<1x9x8x4xf32, #tpu.memory_space<vmem>>, vector<1x1x8x4xf32>
    %4 = vector.shape_cast %3 : vector<1x1x8x4xf32> to vector<8x4xf32>
    %cst_7 = arith.constant dense<0.000000e+00> : vector<8x1152xf32>
    %5 = tpu.matmul %4, %2, %cst_7 {dimension_numbers = #tpu.dot_dimension_numbers<[1], [0], [0], [1], [0, 0, 1, 1], [], []>} : vector<8x4xf32>, vector<4x1152xf32>, vector<8x1152xf32> -> vector<8x1152xf32>
    %6 = arith.addf %0, %5 : vector<8x1152xf32>
    %c0_8 = arith.constant 0 : index
    %c0_9 = arith.constant 0 : index
    %c0_10 = arith.constant 0 : index
    %c4 = arith.constant 4 : index
    %7 = vector.load %arg3[%c0_8, %c0_9, %c0_10, %c4] : memref<1x1x4x1368xf32, #tpu.memory_space<vmem>>, vector<1x1x4x1152xf32>
    %8 = vector.shape_cast %7 : vector<1x1x4x1152xf32> to vector<4x1152xf32>
    %c0_11 = arith.constant 0 : index
    %c1 = arith.constant 1 : index
    %c0_12 = arith.constant 0 : index
    %c0_13 = arith.constant 0 : index
    %9 = vector.load %arg4[%c0_11, %c1, %c0_12, %c0_13] : memref<1x9x8x4xf32, #tpu.memory_space<vmem>>, vector<1x1x8x4xf32>
    %10 = vector.shape_cast %9 : vector<1x1x8x4xf32> to vector<8x4xf32>
    %cst_14 = arith.constant dense<0.000000e+00> : vector<8x1152xf32>
    %11 = tpu.matmul %10, %8, %cst_14 {dimension_numbers = #tpu.dot_dimension_numbers<[1], [0], [0], [1], [0, 0, 1, 1], [], []>} : vector<8x4xf32>, vector<4x1152xf32>, vector<8x1152xf32> -> vector<8x1152xf32>
    %12 = arith.addf %6, %11 : vector<8x1152xf32>
    %c0_15 = arith.constant 0 : index
    %c0_16 = arith.constant 0 : index
    %c0_17 = arith.constant 0 : index
    %c8 = arith.constant 8 : index
    %13 = vector.load %arg3[%c0_15, %c0_16, %c0_17, %c8] : memref<1x1x4x1368xf32, #tpu.memory_space<vmem>>, vector<1x1x4x1152xf32>
    %14 = vector.shape_cast %13 : vector<1x1x4x1152xf32> to vector<4x1152xf32>
    %c0_18 = arith.constant 0 : index
    %c2 = arith.constant 2 : index
    %c0_19 = arith.constant 0 : index
    %c0_20 = arith.constant 0 : index
    %15 = vector.load %arg4[%c0_18, %c2, %c0_19, %c0_20] : memref<1x9x8x4xf32, #tpu.memory_space<vmem>>, vector<1x1x8x4xf32>
    %16 = vector.shape_cast %15 : vector<1x1x8x4xf32> to vector<8x4xf32>
    %cst_21 = arith.constant dense<0.000000e+00> : vector<8x1152xf32>
    %17 = tpu.matmul %16, %14, %cst_21 {dimension_numbers = #tpu.dot_dimension_numbers<[1], [0], [0], [1], [0, 0, 1, 1], [], []>} : vector<8x4xf32>, vector<4x1152xf32>, vector<8x1152xf32> -> vector<8x1152xf32>
    %18 = arith.addf %12, %17 : vector<8x1152xf32>
    %c0_22 = arith.constant 0 : index
    %c0_23 = arith.constant 0 : index
    %c0_24 = arith.constant 0 : index
    %c72 = arith.constant 72 : index
    %19 = vector.load %arg3[%c0_22, %c0_23, %c0_24, %c72] : memref<1x1x4x1368xf32, #tpu.memory_space<vmem>>, vector<1x1x4x1152xf32>
    %20 = vector.shape_cast %19 : vector<1x1x4x1152xf32> to vector<4x1152xf32>
    %c0_25 = arith.constant 0 : index
    %c3 = arith.constant 3 : index
    %c0_26 = arith.constant 0 : index
    %c0_27 = arith.constant 0 : index
    %21 = vector.load %arg4[%c0_25, %c3, %c0_26, %c0_27] : memref<1x9x8x4xf32, #tpu.memory_space<vmem>>, vector<1x1x8x4xf32>
    %22 = vector.shape_cast %21 : vector<1x1x8x4xf32> to vector<8x4xf32>
    %cst_28 = arith.constant dense<0.000000e+00> : vector<8x1152xf32>
    %23 = tpu.matmul %22, %20, %cst_28 {dimension_numbers = #tpu.dot_dimension_numbers<[1], [0], [0], [1], [0, 0, 1, 1], [], []>} : vector<8x4xf32>, vector<4x1152xf32>, vector<8x1152xf32> -> vector<8x1152xf32>
    %24 = arith.addf %18, %23 : vector<8x1152xf32>
    %c0_29 = arith.constant 0 : index
    %c0_30 = arith.constant 0 : index
    %c0_31 = arith.constant 0 : index
    %c76 = arith.constant 76 : index
    %25 = vector.load %arg3[%c0_29, %c0_30, %c0_31, %c76] : memref<1x1x4x1368xf32, #tpu.memory_space<vmem>>, vector<1x1x4x1152xf32>
    %26 = vector.shape_cast %25 : vector<1x1x4x1152xf32> to vector<4x1152xf32>
    %c0_32 = arith.constant 0 : index
    %c4_33 = arith.constant 4 : index
    %c0_34 = arith.constant 0 : index
    %c0_35 = arith.constant 0 : index
    %27 = vector.load %arg4[%c0_32, %c4_33, %c0_34, %c0_35] : memref<1x9x8x4xf32, #tpu.memory_space<vmem>>, vector<1x1x8x4xf32>
    %28 = vector.shape_cast %27 : vector<1x1x8x4xf32> to vector<8x4xf32>
    %cst_36 = arith.constant dense<0.000000e+00> : vector<8x1152xf32>
    %29 = tpu.matmul %28, %26, %cst_36 {dimension_numbers = #tpu.dot_dimension_numbers<[1], [0], [0], [1], [0, 0, 1, 1], [], []>} : vector<8x4xf32>, vector<4x1152xf32>, vector<8x1152xf32> -> vector<8x1152xf32>
    %30 = arith.addf %24, %29 : vector<8x1152xf32>
    %c0_37 = arith.constant 0 : index
    %c0_38 = arith.constant 0 : index
    %c0_39 = arith.constant 0 : index
    %c80 = arith.constant 80 : index
    %31 = vector.load %arg3[%c0_37, %c0_38, %c0_39, %c80] : memref<1x1x4x1368xf32, #tpu.memory_space<vmem>>, vector<1x1x4x1152xf32>
    %32 = vector.shape_cast %31 : vector<1x1x4x1152xf32> to vector<4x1152xf32>
    %c0_40 = arith.constant 0 : index
    %c5 = arith.constant 5 : index
    %c0_41 = arith.constant 0 : index
    %c0_42 = arith.constant 0 : index
    %33 = vector.load %arg4[%c0_40, %c5, %c0_41, %c0_42] : memref<1x9x8x4xf32, #tpu.memory_space<vmem>>, vector<1x1x8x4xf32>
    %34 = vector.shape_cast %33 : vector<1x1x8x4xf32> to vector<8x4xf32>
    %cst_43 = arith.constant dense<0.000000e+00> : vector<8x1152xf32>
    %35 = tpu.matmul %34, %32, %cst_43 {dimension_numbers = #tpu.dot_dimension_numbers<[1], [0], [0], [1], [0, 0, 1, 1], [], []>} : vector<8x4xf32>, vector<4x1152xf32>, vector<8x1152xf32> -> vector<8x1152xf32>
    %36 = arith.addf %30, %35 : vector<8x1152xf32>
    %c0_44 = arith.constant 0 : index
    %c0_45 = arith.constant 0 : index
    %c0_46 = arith.constant 0 : index
    %c144 = arith.constant 144 : index
    %37 = vector.load %arg3[%c0_44, %c0_45, %c0_46, %c144] : memref<1x1x4x1368xf32, #tpu.memory_space<vmem>>, vector<1x1x4x1152xf32>
    %38 = vector.shape_cast %37 : vector<1x1x4x1152xf32> to vector<4x1152xf32>
    %c0_47 = arith.constant 0 : index
    %c6 = arith.constant 6 : index
    %c0_48 = arith.constant 0 : index
    %c0_49 = arith.constant 0 : index
    %39 = vector.load %arg4[%c0_47, %c6, %c0_48, %c0_49] : memref<1x9x8x4xf32, #tpu.memory_space<vmem>>, vector<1x1x8x4xf32>
    %40 = vector.shape_cast %39 : vector<1x1x8x4xf32> to vector<8x4xf32>
    %cst_50 = arith.constant dense<0.000000e+00> : vector<8x1152xf32>
    %41 = tpu.matmul %40, %38, %cst_50 {dimension_numbers = #tpu.dot_dimension_numbers<[1], [0], [0], [1], [0, 0, 1, 1], [], []>} : vector<8x4xf32>, vector<4x1152xf32>, vector<8x1152xf32> -> vector<8x1152xf32>
    %42 = arith.addf %36, %41 : vector<8x1152xf32>
    %c0_51 = arith.constant 0 : index
    %c0_52 = arith.constant 0 : index
    %c0_53 = arith.constant 0 : index
    %c148 = arith.constant 148 : index
    %43 = vector.load %arg3[%c0_51, %c0_52, %c0_53, %c148] : memref<1x1x4x1368xf32, #tpu.memory_space<vmem>>, vector<1x1x4x1152xf32>
    %44 = vector.shape_cast %43 : vector<1x1x4x1152xf32> to vector<4x1152xf32>
    %c0_54 = arith.constant 0 : index
    %c7 = arith.constant 7 : index
    %c0_55 = arith.constant 0 : index
    %c0_56 = arith.constant 0 : index
    %45 = vector.load %arg4[%c0_54, %c7, %c0_55, %c0_56] : memref<1x9x8x4xf32, #tpu.memory_space<vmem>>, vector<1x1x8x4xf32>
    %46 = vector.shape_cast %45 : vector<1x1x8x4xf32> to vector<8x4xf32>
    %cst_57 = arith.constant dense<0.000000e+00> : vector<8x1152xf32>
    %47 = tpu.matmul %46, %44, %cst_57 {dimension_numbers = #tpu.dot_dimension_numbers<[1], [0], [0], [1], [0, 0, 1, 1], [], []>} : vector<8x4xf32>, vector<4x1152xf32>, vector<8x1152xf32> -> vector<8x1152xf32>
    %48 = arith.addf %42, %47 : vector<8x1152xf32>
    %c0_58 = arith.constant 0 : index
    %c0_59 = arith.constant 0 : index
    %c0_60 = arith.constant 0 : index
    %c152 = arith.constant 152 : index
    %49 = vector.load %arg3[%c0_58, %c0_59, %c0_60, %c152] : memref<1x1x4x1368xf32, #tpu.memory_space<vmem>>, vector<1x1x4x1152xf32>
    %50 = vector.shape_cast %49 : vector<1x1x4x1152xf32> to vector<4x1152xf32>
    %c0_61 = arith.constant 0 : index
    %c8_62 = arith.constant 8 : index
    %c0_63 = arith.constant 0 : index
    %c0_64 = arith.constant 0 : index
    %51 = vector.load %arg4[%c0_61, %c8_62, %c0_63, %c0_64] : memref<1x9x8x4xf32, #tpu.memory_space<vmem>>, vector<1x1x8x4xf32>
    %52 = vector.shape_cast %51 : vector<1x1x8x4xf32> to vector<8x4xf32>
    %cst_65 = arith.constant dense<0.000000e+00> : vector<8x1152xf32>
    %53 = tpu.matmul %52, %50, %cst_65 {dimension_numbers = #tpu.dot_dimension_numbers<[1], [0], [0], [1], [0, 0, 1, 1], [], []>} : vector<8x4xf32>, vector<4x1152xf32>, vector<8x1152xf32> -> vector<8x1152xf32>
    %54 = arith.addf %48, %53 : vector<8x1152xf32>
    %c0_66 = arith.constant 0 : index
    %c0_67 = arith.constant 0 : index
    %c0_68 = arith.constant 0 : index
    %55 = vector.load %arg5[%c0_66, %c0_67, %c0_68] : memref<1x8x1xf32, #tpu.memory_space<vmem>>, vector<1x8x1xf32>
    %56 = vector.shape_cast %55 : vector<1x8x1xf32> to vector<8x1xf32>
    %57 = vector.broadcast %56 : vector<8x1xf32> to vector<8x1152xf32>
    %58 = arith.addf %54, %57 : vector<8x1152xf32>
    %c0_69 = arith.constant 0 : index
    %c0_70 = arith.constant 0 : index
    %c0_71 = arith.constant 0 : index
    %c0_72 = arith.constant 0 : index
    %59 = vector.load %arg6[%c0_69, %c0_70, %c0_71, %c0_72] : memref<1x1x8x1152xf32, #tpu.memory_space<vmem>>, vector<1x1x8x1152xf32>
    %60 = vector.shape_cast %59 : vector<1x1x8x1152xf32> to vector<8x1152xf32>
    %61 = vector.shape_cast %58 : vector<8x1152xf32> to vector<1x1x8x1152xf32>
    tpu.vector_store %arg6[%c0_69, %c0_70, %c0_71, %c0_72], %61 {strides = array<i32>} : memref<1x1x8x1152xf32, #tpu.memory_space<vmem>>, vector<1x1x8x1152xf32>,
    return
  }
  func.func @transform_0(%arg0: i32, %arg1: i32, %arg2: i32) -> (i32, i32, i32, i32) {
    %c0_i32 = arith.constant 0 : i32
    %c0_i32_0 = arith.constant 0 : i32
    %c0_i32_1 = arith.constant 0 : i32
    return %arg0, %arg1, %c0_i32, %c0_i32_0 : i32, i32, i32, i32
  }
  func.func @transform_1(%arg0: i32, %arg1: i32, %arg2: i32) -> (i32, i32, i32, i32) {
    %c0_i32 = arith.constant 0 : i32
    %c0_i32_0 = arith.constant 0 : i32
    %c0_i32_1 = arith.constant 0 : i32
    %c0_i32_2 = arith.constant 0 : i32
    return %arg1, %c0_i32, %c0_i32_0, %c0_i32_1 : i32, i32, i32, i32
  }
  func.func @transform_2(%arg0: i32, %arg1: i32, %arg2: i32) -> (i32, i32, i32) {
    %c0_i32 = arith.constant 0 : i32
    %c0_i32_0 = arith.constant 0 : i32
    %c0_i32_1 = arith.constant 0 : i32
    return %arg1, %c0_i32, %c0_i32_0 : i32, i32, i32
  }
  func.func @transform_3(%arg0: i32, %arg1: i32, %arg2: i32) -> (i32, i32, i32, i32) {
    %c0_i32 = arith.constant 0 : i32
    %c0_i32_0 = arith.constant 0 : i32
    return %arg0, %arg1, %c0_i32, %arg2 : i32, i32, i32, i32
  }
}

</mosaic_0001>

<bundles_post_ra>
// kernel: conv2d_forward.1
= control target key start
LH: loop header
LB: loop body
LE: loop exit
PB: predicated region body
PF: predicated region fallthrough
CT: control target
= control target key end

     0   :  { %s4619_s12 = smov 0   ;;  %s4621_s13 = smov 0   ;;  %s5123_s0 = inlined_call_operand.vmem [shape: f32[2,1,4,1368], index: 0, kind: input, shape index: {}]   ;;  %s5124_s1 = inlined_call_operand.vmem [shape: f32[1,9,8,4], index: 1, kind: input, shape index: {}]   ;;  %s5125_s2 = inlined_call_operand.vmem [shape: f32[1,8,1], index: 2, kind: input, shape index: {}]   ;;  %s5126_s3 = inlined_call_operand.vmem [shape: f32[2,1,8,1152], index: 3, kind: output, shape index: {}]  }
   0x1   :  { %s4623_s14 = smov 0  }
   0x2 LB: > { %s32_s15 = sadd.s32 1, %s4582_s13  ;;  %p4250_p0 = scmp.ge.s32.totalorder %s4586_s14, 1  ;;  %s4586_s14 = sphi %s4623_s14, %s13_s14   ;;  %s4582_s13 = sphi %s4621_s13, %s5128_s13   ;;  %s4578_s12 = sphi %s4619_s12, %s5127_s12  }
   0x3   : > { %p34_p1 = scmp.ge.s32.totalorder %s32_s15, 2  ;;  %p185_p2 = scmp.lt.s32.totalorder %s4586_s14, 3 }
   0x5   : > { %s5130_s15 = smov (%p34_p1, %s32_s15), 0  ;;  %p186_p3 = pnand %p4250_p0, %p185_p2 }
   0x6   : > { %p230_p4 = scmp.lt.s32.totalorder (!%p186_p3), %s4578_s12, 1  ;;  %v4588_v0 = vmov (!%p186_p3), 0.0   ;;  %s4589_s20 = smov (!%p186_p3), 124   ;;  %vm301_vm0 = vcmask (!%p186_p3), 1014784   ;;  %vm315_vm1 = vcmask (!%p186_p3), 1043456   ;;  %v4253_v29 = vld [vmem:[%s5124_s1 + $0x8] sm:$0xff] (!%p186_p3) }
   0x7   : > { %189 = sbr.rel (%p186_p3) target bundleno = 514 (0x202), region = 32  ;;  %398 = vmatprep.mubr.f32.mxu0 (!%p186_p3), %v4588_v0  ;;  %469 = vmatprep.mubr.f32.mxu1 (!%p186_p3), %v4588_v0  ;;  %s4590_s21 = smov (!%p186_p3), 120   ;;  %vm311_vm2 = vcmask (!%p186_p3), 31744   ;;  %vm4596_vm3 = vmmov (!%p186_p3), 0   ;;  %v267_v43 = vld [vmem:[%s5124_s1] sm:$0xff] (!%p186_p3)  ;;  %vm1101_vm4 = vcmask (!%p186_p3), 982016  }
   0x8   : > { %s4591_s22 = smov (!%p186_p3), 56   ;;  %s4592_s23 = smov (!%p186_p3), 52   ;;  %v4282_v54 = vld [vmem:[%s5124_s1 + $0x10] sm:$0xff] (!%p186_p3)  ;;  %vm1532_vm5 = vcmask (!%p186_p3), 457728   ;;  %vm1963_vm6 = vcmask (!%p186_p3), 424960   ;;  %vm2394_vm7 = vcmask (!%p186_p3), 392192  }
   0x9   : > { %s4593_s24 = smov (!%p186_p3), 48   ;;  %s4594_s25 = smov (!%p186_p3), 112   ;;  %vm2825_vm8 = vcmask (!%p186_p3), 916480   ;;  %vm3256_vm9 = vcmask (!%p186_p3), 883712   ;;  %vm3687_vm10 = vcmask (!%p186_p3), 850944  }
   0xa   : > { %s4595_s26 = smov (!%p186_p3), 108   ;;  %s4597_s29 = smov (!%p186_p3), 104  }
   0xe   : > { %s5132_s12 = smov (!%p230_p4, %s4578_s12), 1 }
   0xf   : > { %s4516_s16 = smul.u32 44, %s5132_s12 }
  0x11   : > { %s4643_s19 = scalar_lea.vmem %s5123_s0, %s4516_s16 }
  0x12   : > { %v4648_v1 = vld [vmem:[%s4643_s19 + $0x8] sm:$0xff]  ;;  %v4651_v2 = vld [vmem:[%s4643_s19] sm:$0xff]  ;;  %v4656_v3 = vld [vmem:[%s4643_s19 + $0x10] sm:$0xff] }
  0x13   : > { %285 = vrot.lane.b32.xlu0 %v4648_v1, %s4589_s20  ;;  %281 = vrot.lane.b32.xlu1 %v4651_v2, %s4589_s20  ;;  %v4659_v4 = vld [vmem:[%s4643_s19 + $0x18] sm:$0xff]  ;;  %v4663_v5 = vcombine.high %v4656_v3, %v4656_v3  ;;  %v4669_v6 = vcombine.high %v4648_v1, %v4648_v1  ;;  %v4673_v7 = vcombine.high %v4651_v2, %v4651_v2  ;;  %v268_v9 = vld [vmem:[%s4643_s19 + $0x20] sm:$0xff] }
  0x14   : > { %v4679_v8 = vcombine.high %v4659_v4, %v4659_v4  ;;  %v280_v10 = vcombine.high %v268_v9, %v268_v9  ;;  %v4715_v11 = vld [vmem:[%s4643_s19 + $0x4] sm:$0xff]  ;;  %v4725_v13 = vld [vmem:[%s4643_s19 + $0xc] sm:$0xff]  ;;  %v4728_v14 = vld [vmem:[%s4643_s19 + $0x14] sm:$0xff] }
  0x15   : > { %v4721_v12 = vcombine.high %v4715_v11, %v4715_v11  ;;  %v4734_v15 = vcombine.high %v4728_v14, %v4728_v14  ;;  %v4738_v16 = vcombine.high %v4725_v13, %v4725_v13  ;;  %v4742_v17 = vld [vmem:[%s4643_s19 + $0x1c] sm:$0xff]  ;;  %v4751_v19 = vld [vmem:[%s4643_s19 + $0x24] sm:$0xff] }
  0x16   : > { %v4747_v18 = vcombine.high %v4742_v17, %v4742_v17  ;;  %v4757_v20 = vcombine.high %v4751_v19, %v4751_v19  ;;  %v266_v53 = vld [vmem:[%s4643_s19 + $0x20] sm:$0xf] }
  0x17   : > { %293 = vrot.lane.b32.xlu0 %v4659_v4, %s4589_s20  ;;  %291 = vrot.lane.b32.xlu1 %v4663_v5, %s4589_s20 }
  0x1b   : > { %287 = vrot.lane.b32.xlu1 %v4669_v6, %s4589_s20  ;;  %283 = vrot.lane.b32.xlu0 %v4673_v7, %s4589_s20 }
  0x1f   : > { %295 = vrot.lane.b32.xlu1 %v4679_v8, %s4589_s20  ;;  %289 = vrot.lane.b32.xlu0 %v4656_v3, %s4589_s20 }
  0x23   : > { %299 = vrot.lane.b32.xlu1 %v280_v10, %s4589_s20  ;;  %297 = vrot.lane.b32.xlu0 %v268_v9, %s4589_s20 }
  0x27   : > { %1085 = vrot.lane.b32.xlu1 %v4648_v1, %s4590_s21  ;;  %1083 = vrot.lane.b32.xlu0 %v4673_v7, %s4590_s21 }
  0x2b   : > { %1091 = vrot.lane.b32.xlu1 %v4663_v5, %s4590_s21  ;;  %1081 = vrot.lane.b32.xlu0 %v4651_v2, %s4590_s21 }
  0x2f   : > { %1087 = vrot.lane.b32.xlu1 %v4669_v6, %s4590_s21  ;;  %1093 = vrot.lane.b32.xlu0 %v4659_v4, %s4590_s21 }
  0x33   : > { %1095 = vrot.lane.b32.xlu1 %v4679_v8, %s4590_s21  ;;  %1089 = vrot.lane.b32.xlu0 %v4656_v3, %s4590_s21 }
  0x37   : > { %1099 = vrot.lane.b32.xlu1 %v280_v10, %s4590_s21  ;;  %1097 = vrot.lane.b32.xlu0 %v268_v9, %s4590_s21 }
  0x3b   : > { %1516 = vrot.lane.b32.xlu1 %v4648_v1, %s4591_s22  ;;  %1514 = vrot.lane.b32.xlu0 %v4673_v7, %s4591_s22 }
  0x3f   : > { %1518 = vrot.lane.b32.xlu1 %v4669_v6, %s4591_s22  ;;  %1512 = vrot.lane.b32.xlu0 %v4651_v2, %s4591_s22 }
  0x43   : > { %1522 = vrot.lane.b32.xlu1 %v4663_v5, %s4591_s22  ;;  %1520 = vrot.lane.b32.xlu0 %v4656_v3, %s4591_s22 }
  0x47   : > { %1526 = vrot.lane.b32.xlu1 %v4679_v8, %s4591_s22  ;;  %1524 = vrot.lane.b32.xlu0 %v4659_v4, %s4591_s22 }
  0x4b   : > { %1945 = vrot.lane.b32.xlu1 %v4673_v7, %s4592_s23  ;;  %1528 = vrot.lane.b32.xlu0 %v268_v9, %s4591_s22 }
  0x4f   : > { %1943 = vrot.lane.b32.xlu1 %v4651_v2, %s4592_s23  ;;  %1947 = vrot.lane.b32.xlu0 %v4648_v1, %s4592_s23 }
  0x53   : > { %1953 = vrot.lane.b32.xlu1 %v4663_v5, %s4592_s23  ;;  %1530 = vrot.lane.b32.xlu0 %v280_v10, %s4591_s22 }
  0x57   : > { %1949 = vrot.lane.b32.xlu1 %v4669_v6, %s4592_s23  ;;  %1955 = vrot.lane.b32.xlu0 %v4659_v4, %s4592_s23 }
  0x5b   : > { %1957 = vrot.lane.b32.xlu1 %v4679_v8, %s4592_s23  ;;  %1951 = vrot.lane.b32.xlu0 %v4656_v3, %s4592_s23 }
  0x5f   : > { %1961 = vrot.lane.b32.xlu1 %v280_v10, %s4592_s23  ;;  %1959 = vrot.lane.b32.xlu0 %v268_v9, %s4592_s23 }
  0x63   : > { %2378 = vrot.lane.b32.xlu1 %v4648_v1, %s4593_s24  ;;  %2376 = vrot.lane.b32.xlu0 %v4673_v7, %s4593_s24 }
  0x67   : > { %2380 = vrot.lane.b32.xlu1 %v4669_v6, %s4593_s24  ;;  %2374 = vrot.lane.b32.xlu0 %v4651_v2, %s4593_s24 }
  0x6b   : > { %2384 = vrot.lane.b32.xlu1 %v4663_v5, %s4593_s24  ;;  %2382 = vrot.lane.b32.xlu0 %v4656_v3, %s4593_s24 }
  0x6f   : > { %2388 = vrot.lane.b32.xlu1 %v4679_v8, %s4593_s24  ;;  %2386 = vrot.lane.b32.xlu0 %v4659_v4, %s4593_s24 }
  0x73   : > { %2807 = vrot.lane.b32.xlu1 %v4721_v12, %s4594_s25  ;;  %2390 = vrot.lane.b32.xlu0 %v268_v9, %s4593_s24  ;;  %v4297_v9 = vld [vmem:[%s5124_s1 + $0x18] sm:$0xff] }
  0x77   : > { %2805 = vrot.lane.b32.xlu1 %v4715_v11, %s4594_s25  ;;  %2809 = vrot.lane.b32.xlu0 %v4725_v13, %s4594_s25 }
  0x7b   : > { %2815 = vrot.lane.b32.xlu1 %v4734_v15, %s4594_s25  ;;  %2392 = vrot.lane.b32.xlu0 %v280_v10, %s4593_s24 }
  0x7f   : > { %2811 = vrot.lane.b32.xlu1 %v4738_v16, %s4594_s25  ;;  %2817 = vrot.lane.b32.xlu0 %v4742_v17, %s4594_s25 }
  0x83   : > { %2819 = vrot.lane.b32.xlu1 %v4747_v18, %s4594_s25  ;;  %2813 = vrot.lane.b32.xlu0 %v4728_v14, %s4594_s25 }
  0x85   : > { %v286_v21 = vpop.permute.xlu0 %285  ;;  %v282_v22 = vpop.permute.xlu1 %281 }
  0x87   : > { %2823 = vrot.lane.b32.xlu1 %v4757_v20, %s4594_s25  ;;  %2821 = vrot.lane.b32.xlu0 %v4751_v19, %s4594_s25  ;;  %s4517_s25 = smul.u32 72, %s5132_s12 }
  0x89   : > { %v294_v23 = vpop.permute.xlu0 %293  ;;  %v292_v24 = vpop.permute.xlu1 %291  ;;  %s5103_s28 = scalar_lea.vmem %s5126_s3, %s4517_s25 }
  0x8a   : > { %v307_v30 = vsel %vm301_vm0, %v292_v24, %v294_v23 }
  0x8b   : > { %3240 = vrot.lane.b32.xlu1 %v4725_v13, %s4595_s26  ;;  %3238 = vrot.lane.b32.xlu0 %v4721_v12, %s4595_s26 }
  0x8d   : > { %v288_v25 = vpop.permute.xlu1 %287  ;;  %v284_v26 = vpop.permute.xlu0 %283 }
  0x8e   : > { %v303_v27 = vsel %vm301_vm0, %v284_v26, %v286_v21  ;;  %v302_v28 = vsel %vm301_vm0, %v282_v22, %v284_v26  ;;  %v304_v35 = vsel %vm301_vm0, %v286_v21, %v288_v25 }
  0x8f   : > { %3242 = vrot.lane.b32.xlu1 %v4738_v16, %s4595_s26  ;;  %3236 = vrot.lane.b32.xlu0 %v4715_v11, %s4595_s26 }
  0x90   : > { %4254 = vmatprep.subr.msk.mxu0 %vm315_vm1, %v303_v27 }
  0x91   : > { %4255 = vmatpush1.msk.msra.mxu0 %vm315_vm1, %v302_v28  ;;  %v296_v31 = vpop.permute.xlu1 %295  ;;  %v290_v32 = vpop.permute.xlu0 %289 }
  0x92   : > { %4256 = vmatmul.mubr.msk.f32.vlgmr.msra.gmra.mrb[0].mxu0 %vm311_vm2, %v4253_v29  ;;  %4260 = vmatprep.subr.msk.mxu0 %vm315_vm1, %v307_v30  ;;  %v306_v33 = vsel %vm301_vm0, %v290_v32, %v292_v24  ;;  %v305_v34 = vsel %vm301_vm0, %v288_v25, %v290_v32  ;;  %v308_v40 = vsel %vm301_vm0, %v294_v23, %v296_v31  ;;  %v4312_v25 = vld [vmem:[%s5124_s1 + $0x20] sm:$0xff] }
  0x93   : > { %3246 = vrot.lane.b32.xlu1 %v4734_v15, %s4595_s26  ;;  %3244 = vrot.lane.b32.xlu0 %v4728_v14, %s4595_s26 }
  0x94   : > { %4257 = vmatprep.subr.msk.mxu1 %vm315_vm1, %v305_v34  ;;  %4261 = vmatpush1.msk.msra.mxu0 %vm315_vm1, %v306_v33 }
  0x95   : > { %4258 = vmatpush1.msk.msra.mxu1 %vm315_vm1, %v304_v35  ;;  %540 = vmatprep.mubr.f32.mxu0 %v4588_v0  ;;  %v300_v36 = vpop.permute.xlu1 %299  ;;  %v298_v37 = vpop.permute.xlu0 %297 }
  0x96   : > { %4262 = vmatmul.mubr.msk.f32.vlgmr.msra.gmra.mrb[2].mxu0 %vm311_vm2, %v4253_v29  ;;  %v309_v38 = vsel %vm301_vm0, %v296_v31, %v298_v37  ;;  %v310_v39 = vsel %vm301_vm0, %v298_v37, %v300_v36  ;;  %4407 = vmatprep.subr.mxu0 %v4588_v0 }
  0x97   : > { %3250 = vrot.lane.b32.xlu1 %v4747_v18, %s4595_s26  ;;  %3248 = vrot.lane.b32.xlu0 %v4742_v17, %s4595_s26 }
  0x98   : > { %4263 = vmatprep.subr.msk.mxu1 %vm315_vm1, %v309_v38  ;;  %4408 = vmatpush3.msk.msra.mxu0 %vm315_vm1, %v310_v39 }
  0x99   : > { %4259 = vmatmul.mubr.msk.f32.vlgmr.msra.gmra.mrb[0].mxu1 %vm311_vm2, %v4253_v29  ;;  %4409 = vmatprep.mubr.msk.f32.mxu0 %vm4596_vm3, %v4588_v0  ;;  %v1086_v41 = vpop.permute.xlu1 %1085  ;;  %v1084_v42 = vpop.permute.xlu0 %1083 }
  0x9a   : > { %4264 = vmatpush1.msk.msra.mxu1 %vm315_vm1, %v308_v40  ;;  %4410 = vmatmul.mubr.msk.f32.vlgmr.msra.gmra.mrb[4].mxu0 %vm311_vm2, %v4253_v29  ;;  %v1103_v46 = vsel %vm1101_vm4, %v1084_v42, %v1086_v41 }
  0x9b   : > { %4268 = vmatprep.subr.msk.mxu0 %vm315_vm1, %v4673_v7  ;;  %3669 = vrot.lane.b32.xlu1 %v4721_v12, %s4597_s29 }
  0x9c   : > { %3252 = vrot.lane.b32.xlu0 %v4751_v19, %s4595_s26  ;;  %611 = vmatprep.mubr.f32.mxu1 %v4588_v0 }
  0x9d   : > { %4269 = vmatpush1.msk.msra.mxu0 %vm315_vm1, %v4651_v2  ;;  %4265 = vmatmul.mubr.msk.f32.vlgmr.msra.gmra.mrb[2].mxu1 %vm311_vm2, %v4253_v29  ;;  %v1092_v44 = vpop.permute.xlu1 %1091  ;;  %v1082_v45 = vpop.permute.xlu0 %1081 }
  0x9e   : > { %774 = vmatprep.mubr.f32.mxu0 %v4588_v0  ;;  %4274 = vmatprep.subr.msk.mxu0 %vm315_vm1, %v4663_v5  ;;  %v1102_v49 = vsel %vm1101_vm4, %v1082_v45, %v1084_v42 }
  0x9f   : > { %4270 = vmatmul.mubr.msk.f32.vlgmr.msra.gmra.mrb[0].mxu0 %vm311_vm2, %v267_v43  ;;  %4271 = vmatprep.subr.msk.mxu1 %vm315_vm1, %v4669_v6 }
  0xa0   : > { %4275 = vmatpush1.msk.msra.mxu0 %vm315_vm1, %v4656_v3  ;;  %3667 = vrot.lane.b32.xlu1 %v4715_v11, %s4597_s29 }
  0xa1   : > { %4283 = vmatprep.subr.msk.mxu0 %vm315_vm1, %v1103_v46  ;;  %3671 = vrot.lane.b32.xlu0 %v4725_v13, %s4597_s29  ;;  %v1088_v47 = vpop.permute.xlu1 %1087  ;;  %v1094_v48 = vpop.permute.xlu0 %1093  ;;  %v4598_v13 = vmov 0  }
  0xa2   : > { %4272 = vmatpush1.msk.msra.mxu1 %vm315_vm1, %v4648_v1  ;;  %845 = vmatprep.mubr.f32.mxu1 %v4588_v0  ;;  %v1107_v50 = vsel %vm1101_vm4, %v1092_v44, %v1094_v48  ;;  %v1104_v59 = vsel %vm1101_vm4, %v1086_v41, %v1088_v47 }
  0xa3   : > { %4273 = vmatmul.mubr.msk.f32.vlgmr.msra.gmra.mrb[0].mxu1 %vm311_vm2, %v267_v43  ;;  %916 = vmatprep.mubr.f32.mxu0 %v4588_v0 }
  0xa4   : > { %4276 = vmatmul.mubr.msk.f32.vlgmr.msra.gmra.mrb[2].mxu0 %vm311_vm2, %v267_v43  ;;  %4277 = vmatprep.subr.msk.mxu1 %vm315_vm1, %v4679_v8 }
  0xa5   : > { %4284 = vmatpush1.msk.msra.mxu0 %vm315_vm1, %v1102_v49  ;;  %3677 = vrot.lane.b32.xlu1 %v4734_v15, %s4597_s29  ;;  %v1096_v51 = vpop.permute.xlu1 %1095  ;;  %v1090_v52 = vpop.permute.xlu0 %1089 }
  0xa6   : > { %3254 = vrot.lane.b32.xlu0 %v4757_v20, %s4595_s26  ;;  %4278 = vmatpush1.msk.msra.mxu1 %vm315_vm1, %v4659_v4  ;;  %v1105_v55 = vsel %vm1101_vm4, %v1088_v47, %v1090_v52  ;;  %v1106_v56 = vsel %vm1101_vm4, %v1090_v52, %v1092_v44  ;;  %v1108_v4 = vsel %vm1101_vm4, %v1094_v48, %v1096_v51  ;;  %v4327_v47 = vld [vmem:[%s5124_s1 + $0x28] sm:$0xff] }
  0xa7   : > { %987 = vmatprep.mubr.f32.mxu1 %v4588_v0  ;;  %4289 = vmatprep.subr.msk.mxu0 %vm315_vm1, %v1107_v50 }
  0xa8   : > { %4279 = vmatmul.mubr.msk.f32.vlgmr.msra.gmra.mrb[2].mxu1 %vm311_vm2, %v267_v43  ;;  %4412 = vmatprep.subr.mxu1 %v4588_v0 }
  0xa9   : > { %4413 = vmatpush3.msk.msra.mxu1 %vm315_vm1, %v266_v53  ;;  %1196 = vmatprep.mubr.f32.mxu0 %v4588_v0  ;;  %v1100_v57 = vpop.permute.xlu1 %1099  ;;  %v1098_v58 = vpop.permute.xlu0 %1097 }
  0xaa   : > { %3673 = vrot.lane.b32.xlu1 %v4738_v16, %s4597_s29  ;;  %3679 = vrot.lane.b32.xlu0 %v4742_v17, %s4597_s29  ;;  %v1109_v62 = vsel %vm1101_vm4, %v1096_v51, %v1098_v58  ;;  %v1110_v63 = vsel %vm1101_vm4, %v1098_v58, %v1100_v57 }
  0xab   : > { %4414 = vmatprep.mubr.msk.f32.mxu1 %vm4596_vm3, %v4588_v0  ;;  %4285 = vmatmul.mubr.msk.f32.vlgmr.msra.gmra.mrb[0].mxu0 %vm311_vm2, %v4282_v54 }
  0xac   : > { %4286 = vmatprep.subr.msk.mxu1 %vm315_vm1, %v1105_v55  ;;  %4290 = vmatpush1.msk.msra.mxu0 %vm315_vm1, %v1106_v56 }
  0xad   : > { %4415 = vmatmul.mubr.msk.f32.vlgmr.msra.gmra.mrb[4].mxu1 %vm311_vm2, %v267_v43  ;;  %1338 = vmatprep.mubr.f32.mxu0 %v4588_v0  ;;  %v1517_v60 = vpop.permute.xlu1 %1516  ;;  %v1515_v61 = vpop.permute.xlu0 %1514 }
  0xae   : > { %4287 = vmatpush1.msk.msra.mxu1 %vm315_vm1, %v1104_v59  ;;  %4417 = vmatprep.subr.mxu0 %v4588_v0  ;;  %v1534_v1 = vsel %vm1532_vm5, %v1515_v61, %v1517_v60 }
  0xaf   : > { %3681 = vrot.lane.b32.xlu1 %v4747_v18, %s4597_s29  ;;  %3675 = vrot.lane.b32.xlu0 %v4728_v14, %s4597_s29  ;;  %v4081_v14 = vld [vmem:[%s5125_s2] sm:$0xff] }
  0xb0   : > { %1267 = vmatprep.mubr.f32.mxu1 %v4588_v0  ;;  %4291 = vmatmul.mubr.msk.f32.vlgmr.msra.gmra.mrb[2].mxu0 %vm311_vm2, %v4282_v54 }
  0xb1   : > { %4292 = vmatprep.subr.msk.mxu1 %vm315_vm1, %v1109_v62  ;;  %4418 = vmatpush3.msk.msra.mxu0 %vm315_vm1, %v1110_v63  ;;  %v1519_v2 = vpop.permute.xlu1 %1518  ;;  %v1513_v3 = vpop.permute.xlu0 %1512 }
  0xb2   : > { %4288 = vmatmul.mubr.msk.f32.vlgmr.msra.gmra.mrb[0].mxu1 %vm311_vm2, %v4282_v54  ;;  %4298 = vmatprep.subr.msk.mxu0 %vm315_vm1, %v1534_v1  ;;  %v1533_v5 = vsel %vm1532_vm5, %v1513_v3, %v1515_v61  ;;  %v1535_v10 = vsel %vm1532_vm5, %v1517_v60, %v1519_v2 }
  0xb3   : > { %4293 = vmatpush1.msk.msra.mxu1 %vm315_vm1, %v1108_v4  ;;  %3685 = vrot.lane.b32.xlu1 %v4757_v20, %s4597_s29 }
  0xb4   : > { %3683 = vrot.lane.b32.xlu0 %v4751_v19, %s4597_s29  ;;  %4419 = vmatprep.mubr.msk.f32.mxu0 %vm4596_vm3, %v4588_v0 }
  0xb5   : > { %4420 = vmatmul.mubr.msk.f32.vlgmr.msra.gmra.mrb[6].mxu0 %vm311_vm2, %v4282_v54  ;;  %v1523_v6 = vpop.permute.xlu1 %1522  ;;  %v1521_v7 = vpop.permute.xlu0 %1520  ;;  %1409 = vmatprep.mubr.f32.mxu1 %v4588_v0 }
  0xb6   : > { %4299 = vmatpush1.msk.msra.mxu0 %vm315_vm1, %v1533_v5  ;;  %v1536_v8 = vsel %vm1532_vm5, %v1519_v2, %v1521_v7  ;;  %4294 = vmatmul.mubr.msk.f32.vlgmr.msra.gmra.mrb[2].mxu1 %vm311_vm2, %v4282_v54  ;;  %v1537_v16 = vsel %vm1532_vm5, %v1521_v7, %v1523_v6  ;;  %v4342_v2 = vld [vmem:[%s5124_s1 + $0x30] sm:$0xff] }
  0xb7   : > { %4301 = vmatprep.subr.msk.mxu1 %vm315_vm1, %v1536_v8  ;;  %1627 = vmatprep.mubr.f32.mxu0 %v4588_v0 }
  0xb8   : > { %4302 = vmatpush1.msk.msra.mxu1 %vm315_vm1, %v1535_v10  ;;  %1698 = vmatprep.mubr.f32.mxu1 %v4588_v0 }
  0xb9   : > { %v1527_v11 = vpop.permute.xlu1 %1526  ;;  %v1525_v12 = vpop.permute.xlu0 %1524  ;;  %4300 = vmatmul.mubr.msk.f32.vlgmr.msra.gmra.mrb[0].mxu0 %vm311_vm2, %v4297_v9  ;;  %4553 = vset.pattern.permute.xlu0 %v4598_v13 }
  0xba   : > { %v1538_v15 = vsel %vm1532_vm5, %v1523_v6, %v1525_v12  ;;  %4303 = vmatmul.mubr.msk.f32.vlgmr.msra.gmra.mrb[0].mxu1 %vm311_vm2, %v4297_v9  ;;  %1769 = vmatprep.mubr.f32.mxu0 %v4588_v0  ;;  %v1539_v20 = vsel %vm1532_vm5, %v1525_v12, %v1527_v11 }
  0xbb   : > { %4304 = vmatprep.subr.msk.mxu0 %vm315_vm1, %v1538_v15  ;;  %1840 = vmatprep.mubr.f32.mxu1 %v4588_v0 }
  0xbc   : > { %4305 = vmatpush1.msk.msra.mxu0 %vm315_vm1, %v1537_v16  ;;  %4084 = vperm.xlu0 %4553, %v4081_v14  }
  0xbd   : > { %v1946_v17 = vpop.permute.xlu1 %1945  ;;  %v1529_v18 = vpop.permute.xlu0 %1528  ;;  %4306 = vmatmul.mubr.msk.f32.vlgmr.msra.gmra.mrb[2].mxu0 %vm311_vm2, %v4297_v9 }
  0xbe   : > { %v1540_v19 = vsel %vm1532_vm5, %v1527_v11, %v1529_v18  ;;  %2058 = vmatprep.mubr.f32.mxu0 %v4588_v0 }
  0xbf   : > { %4307 = vmatprep.subr.msk.mxu1 %vm315_vm1, %v1540_v19 }
  0xc0   : > { %4308 = vmatpush1.msk.msra.mxu1 %vm315_vm1, %v1539_v20 }
  0xc1   : > { %v1944_v21 = vpop.permute.xlu1 %1943  ;;  %v1948_v22 = vpop.permute.xlu0 %1947  ;;  %4422 = vmatprep.subr.mxu1 %v4588_v0  ;;  %4309 = vmatmul.mubr.msk.f32.vlgmr.msra.gmra.mrb[2].mxu1 %vm311_vm2, %v4297_v9 }
  0xc2   : > { %v1964_v23 = vsel %vm1963_vm6, %v1944_v21, %v1946_v17  ;;  %v1965_v24 = vsel %vm1963_vm6, %v1946_v17, %v1948_v22  ;;  %4424 = vmatprep.mubr.msk.f32.mxu1 %vm4596_vm3, %v4588_v0 }
  0xc3   : > { %4313 = vmatprep.subr.msk.mxu0 %vm315_vm1, %v1965_v24  ;;  %v4357_v24 = vld [vmem:[%s5124_s1 + $0x38] sm:$0xff] }
  0xc4   : > { %4314 = vmatpush1.msk.msra.mxu0 %vm315_vm1, %v1964_v23 }
  0xc5   : > { %v1954_v26 = vpop.permute.xlu1 %1953  ;;  %v1531_v27 = vpop.permute.xlu0 %1530  ;;  %4315 = vmatmul.mubr.msk.f32.vlgmr.msra.gmra.mrb[0].mxu0 %vm311_vm2, %v4312_v25 }
  0xc6   : > { %v1541_v28 = vsel %vm1532_vm5, %v1529_v18, %v1531_v27  ;;  %2200 = vmatprep.mubr.f32.mxu0 %v4588_v0 }
  0xc7   : > { %4423 = vmatpush3.msk.msra.mxu1 %vm315_vm1, %v1541_v28 }
  0xc8   : > { %4425 = vmatmul.mubr.msk.f32.vlgmr.msra.gmra.mrb[6].mxu1 %vm311_vm2, %v4297_v9 }
  0xc9   : > { %v1950_v29 = vpop.permute.xlu1 %1949  ;;  %v1956_v30 = vpop.permute.xlu0 %1955  ;;  %2129 = vmatprep.mubr.f32.mxu1 %v4588_v0 }
  0xca   : > { %v1969_v31 = vsel %vm1963_vm6, %v1954_v26, %v1956_v30  ;;  %v1966_v36 = vsel %vm1963_vm6, %v1948_v22, %v1950_v29 }
  0xcb   : > { %4319 = vmatprep.subr.msk.mxu0 %vm315_vm1, %v1969_v31 }
  0xcd   : > { %v1958_v32 = vpop.permute.xlu1 %1957  ;;  %v1952_v33 = vpop.permute.xlu0 %1951 }
  0xce   : > { %v1967_v34 = vsel %vm1963_vm6, %v1950_v29, %v1952_v33  ;;  %v1968_v35 = vsel %vm1963_vm6, %v1952_v33, %v1954_v26  ;;  %v1970_v41 = vsel %vm1963_vm6, %v1956_v30, %v1958_v32 }
  0xcf   : > { %4316 = vmatprep.subr.msk.mxu1 %vm315_vm1, %v1967_v34  ;;  %4320 = vmatpush1.msk.msra.mxu0 %vm315_vm1, %v1968_v35 }
  0xd0   : > { %4317 = vmatpush1.msk.msra.mxu1 %vm315_vm1, %v1966_v36  ;;  %4427 = vmatprep.subr.mxu0 %v4588_v0 }
  0xd1   : > { %v1962_v37 = vpop.permute.xlu1 %1961  ;;  %v1960_v38 = vpop.permute.xlu0 %1959  ;;  %4321 = vmatmul.mubr.msk.f32.vlgmr.msra.gmra.mrb[2].mxu0 %vm311_vm2, %v4312_v25  ;;  %4318 = vmatmul.mubr.msk.f32.vlgmr.msra.gmra.mrb[0].mxu1 %vm311_vm2, %v4312_v25 }
  0xd2   : > { %v1971_v39 = vsel %vm1963_vm6, %v1958_v32, %v1960_v38  ;;  %v1972_v40 = vsel %vm1963_vm6, %v1960_v38, %v1962_v37  ;;  %4429 = vmatprep.mubr.msk.f32.mxu0 %vm4596_vm3, %v4588_v0  ;;  %2271 = vmatprep.mubr.f32.mxu1 %v4588_v0 }
  0xd3   : > { %4322 = vmatprep.subr.msk.mxu1 %vm315_vm1, %v1971_v39  ;;  %4428 = vmatpush3.msk.msra.mxu0 %vm315_vm1, %v1972_v40 }
  0xd4   : > { %4323 = vmatpush1.msk.msra.mxu1 %vm315_vm1, %v1970_v41 }
  0xd5   : > { %v2379_v42 = vpop.permute.xlu1 %2378  ;;  %v2377_v43 = vpop.permute.xlu0 %2376  ;;  %4430 = vmatmul.mubr.msk.f32.vlgmr.msra.gmra.mrb[8].mxu0 %vm311_vm2, %v4312_v25  ;;  %4324 = vmatmul.mubr.msk.f32.vlgmr.msra.gmra.mrb[2].mxu1 %vm311_vm2, %v4312_v25 }
  0xd6   : > { %v2396_v44 = vsel %vm2394_vm7, %v2377_v43, %v2379_v42  ;;  %2489 = vmatprep.mubr.f32.mxu0 %v4588_v0  ;;  %2560 = vmatprep.mubr.f32.mxu1 %v4588_v0 }
  0xd7   : > { %4328 = vmatprep.subr.msk.mxu0 %vm315_vm1, %v2396_v44 }
  0xd9   : > { %v2381_v45 = vpop.permute.xlu1 %2380  ;;  %v2375_v46 = vpop.permute.xlu0 %2374 }
  0xda   : > { %v2395_v48 = vsel %vm2394_vm7, %v2375_v46, %v2377_v43  ;;  %v2397_v52 = vsel %vm2394_vm7, %v2379_v42, %v2381_v45  ;;  %v4372_v42 = vld [vmem:[%s5124_s1 + $0x40] sm:$0xff] }
  0xdb   : > { %4329 = vmatpush1.msk.msra.mxu0 %vm315_vm1, %v2395_v48 }
  0xdc   : > { %4330 = vmatmul.mubr.msk.f32.vlgmr.msra.gmra.mrb[0].mxu0 %vm311_vm2, %v4327_v47 }
  0xdd   : > { %v2385_v49 = vpop.permute.xlu1 %2384  ;;  %v2383_v50 = vpop.permute.xlu0 %2382  ;;  %2631 = vmatprep.mubr.f32.mxu0 %v4588_v0 }
  0xde   : > { %v2398_v51 = vsel %vm2394_vm7, %v2381_v45, %v2383_v50  ;;  %v2399_v56 = vsel %vm2394_vm7, %v2383_v50, %v2385_v49 }
  0xdf   : > { %4331 = vmatprep.subr.msk.mxu1 %vm315_vm1, %v2398_v51 }
  0xe0   : > { %4332 = vmatpush1.msk.msra.mxu1 %vm315_vm1, %v2397_v52 }
  0xe1   : > { %v2389_v53 = vpop.permute.xlu1 %2388  ;;  %v2387_v54 = vpop.permute.xlu0 %2386  ;;  %4333 = vmatmul.mubr.msk.f32.vlgmr.msra.gmra.mrb[0].mxu1 %vm311_vm2, %v4327_v47 }
  0xe2   : > { %v2400_v55 = vsel %vm2394_vm7, %v2385_v49, %v2387_v54  ;;  %2702 = vmatprep.mubr.f32.mxu1 %v4588_v0  ;;  %v2401_v60 = vsel %vm2394_vm7, %v2387_v54, %v2389_v53 }
  0xe3   : > { %4334 = vmatprep.subr.msk.mxu0 %vm315_vm1, %v2400_v55 }
  0xe4   : > { %4335 = vmatpush1.msk.msra.mxu0 %vm315_vm1, %v2399_v56 }
  0xe5   : > { %v2808_v57 = vpop.permute.xlu1 %2807  ;;  %v2391_v58 = vpop.permute.xlu0 %2390  ;;  %4336 = vmatmul.mubr.msk.f32.vlgmr.msra.gmra.mrb[2].mxu0 %vm311_vm2, %v4327_v47 }
  0xe6   : > { %v2402_v59 = vsel %vm2394_vm7, %v2389_v53, %v2391_v58  ;;  %2920 = vmatprep.mubr.f32.mxu0 %v4588_v0 }
  0xe7   : > { %4337 = vmatprep.subr.msk.mxu1 %vm315_vm1, %v2402_v59 }
  0xe8   : > { %4338 = vmatpush1.msk.msra.mxu1 %vm315_vm1, %v2401_v60 }
  0xe9   : > { %v2806_v61 = vpop.permute.xlu1 %2805  ;;  %v2810_v62 = vpop.permute.xlu0 %2809  ;;  %4339 = vmatmul.mubr.msk.f32.vlgmr.msra.gmra.mrb[2].mxu1 %vm311_vm2, %v4327_v47  ;;  %4432 = vmatprep.subr.mxu1 %v4588_v0 }
  0xea   : > { %v2826_v63 = vsel %vm2825_vm8, %v2806_v61, %v2808_v57  ;;  %v2827_v1 = vsel %vm2825_vm8, %v2808_v57, %v2810_v62  ;;  %4434 = vmatprep.mubr.msk.f32.mxu1 %vm4596_vm3, %v4588_v0 }
  0xeb   : > { %4343 = vmatprep.subr.msk.mxu0 %vm315_vm1, %v2827_v1 }
  0xec   : > { %4344 = vmatpush1.msk.msra.mxu0 %vm315_vm1, %v2826_v63 }
  0xed   : > { %v2816_v3 = vpop.permute.xlu1 %2815  ;;  %v2393_v4 = vpop.permute.xlu0 %2392  ;;  %4345 = vmatmul.mubr.msk.f32.vlgmr.msra.gmra.mrb[0].mxu0 %vm311_vm2, %v4342_v2 }
  0xee   : > { %v2403_v5 = vsel %vm2394_vm7, %v2391_v58, %v2393_v4  ;;  %3062 = vmatprep.mubr.f32.mxu0 %v4588_v0 }
  0xef   : > { %4433 = vmatpush3.msk.msra.mxu1 %vm315_vm1, %v2403_v5 }
  0xf0   : > { %4435 = vmatmul.mubr.msk.f32.vlgmr.msra.gmra.mrb[8].mxu1 %vm311_vm2, %v4327_v47 }
  0xf1   : > { %v2812_v6 = vpop.permute.xlu1 %2811  ;;  %v2818_v7 = vpop.permute.xlu0 %2817  ;;  %2991 = vmatprep.mubr.f32.mxu1 %v4588_v0 }
  0xf2   : > { %v2831_v8 = vsel %vm2825_vm8, %v2816_v3, %v2818_v7  ;;  %v2828_v13 = vsel %vm2825_vm8, %v2810_v62, %v2812_v6 }
  0xf3   : > { %4349 = vmatprep.subr.msk.mxu0 %vm315_vm1, %v2831_v8 }
  0xf5   : > { %v2820_v9 = vpop.permute.xlu1 %2819  ;;  %v2814_v10 = vpop.permute.xlu0 %2813 }
  0xf6   : > { %v2829_v11 = vsel %vm2825_vm8, %v2812_v6, %v2814_v10  ;;  %v2830_v12 = vsel %vm2825_vm8, %v2814_v10, %v2816_v3  ;;  %v2832_v18 = vsel %vm2825_vm8, %v2818_v7, %v2820_v9 }
  0xf7   : > { %4346 = vmatprep.subr.msk.mxu1 %vm315_vm1, %v2829_v11  ;;  %4350 = vmatpush1.msk.msra.mxu0 %vm315_vm1, %v2830_v12 }
  0xf8   : > { %4347 = vmatpush1.msk.msra.mxu1 %vm315_vm1, %v2828_v13  ;;  %4351 = vmatmul.mubr.msk.f32.vlgmr.msra.gmra.mrb[2].mxu0 %vm311_vm2, %v4342_v2 }
  0xf9   : > { %v2824_v14 = vpop.permute.xlu1 %2823  ;;  %v2822_v15 = vpop.permute.xlu0 %2821  ;;  %4437 = vmatprep.subr.mxu0 %v4588_v0  ;;  %4439 = vmatprep.mubr.msk.f32.mxu0 %vm4596_vm3, %v4588_v0 }
  0xfa   : > { %v2833_v16 = vsel %vm2825_vm8, %v2820_v9, %v2822_v15  ;;  %v2834_v17 = vsel %vm2825_vm8, %v2822_v15, %v2824_v14  ;;  %4348 = vmatmul.mubr.msk.f32.vlgmr.msra.gmra.mrb[0].mxu1 %vm311_vm2, %v4342_v2 }
  0xfb   : > { %4352 = vmatprep.subr.msk.mxu1 %vm315_vm1, %v2833_v16  ;;  %4438 = vmatpush3.msk.msra.mxu0 %vm315_vm1, %v2834_v17 }
  0xfc   : > { %4353 = vmatpush1.msk.msra.mxu1 %vm315_vm1, %v2832_v18  ;;  %4440 = vmatmul.mubr.msk.f32.vlgmr.msra.gmra.mrb[10].mxu0 %vm311_vm2, %v4342_v2 }
  0xfd   : > { %v3241_v19 = vpop.permute.xlu1 %3240  ;;  %v3239_v20 = vpop.permute.xlu0 %3238  ;;  %3133 = vmatprep.mubr.f32.mxu1 %v4588_v0  ;;  %3351 = vmatprep.mubr.f32.mxu0 %v4588_v0 }
  0xfe   : > { %v3258_v21 = vsel %vm3256_vm9, %v3239_v20, %v3241_v19  ;;  %4354 = vmatmul.mubr.msk.f32.vlgmr.msra.gmra.mrb[2].mxu1 %vm311_vm2, %v4342_v2 }
  0xff   : > { %4358 = vmatprep.subr.msk.mxu0 %vm315_vm1, %v3258_v21  ;;  %3422 = vmatprep.mubr.f32.mxu1 %v4588_v0 }
 0x101   : > { %v3243_v22 = vpop.permute.xlu1 %3242  ;;  %v3237_v23 = vpop.permute.xlu0 %3236 }
 0x102   : > { %v3257_v25 = vsel %vm3256_vm9, %v3237_v23, %v3239_v20  ;;  %v3259_v29 = vsel %vm3256_vm9, %v3241_v19, %v3243_v22 }
 0x103   : > { %4359 = vmatpush1.msk.msra.mxu0 %vm315_vm1, %v3257_v25 }
 0x104   : > { %4360 = vmatmul.mubr.msk.f32.vlgmr.msra.gmra.mrb[0].mxu0 %vm311_vm2, %v4357_v24 }
 0x105   : > { %v3247_v26 = vpop.permute.xlu1 %3246  ;;  %v3245_v27 = vpop.permute.xlu0 %3244  ;;  %3493 = vmatprep.mubr.f32.mxu0 %v4588_v0 }
 0x106   : > { %v3260_v28 = vsel %vm3256_vm9, %v3243_v22, %v3245_v27  ;;  %v3261_v33 = vsel %vm3256_vm9, %v3245_v27, %v3247_v26 }
 0x107   : > { %4361 = vmatprep.subr.msk.mxu1 %vm315_vm1, %v3260_v28 }
 0x108   : > { %4362 = vmatpush1.msk.msra.mxu1 %vm315_vm1, %v3259_v29 }
 0x109   : > { %v3251_v30 = vpop.permute.xlu1 %3250  ;;  %v3249_v31 = vpop.permute.xlu0 %3248  ;;  %4363 = vmatmul.mubr.msk.f32.vlgmr.msra.gmra.mrb[0].mxu1 %vm311_vm2, %v4357_v24 }
 0x10a   : > { %v3262_v32 = vsel %vm3256_vm9, %v3247_v26, %v3249_v31  ;;  %3564 = vmatprep.mubr.f32.mxu1 %v4588_v0  ;;  %v3263_v37 = vsel %vm3256_vm9, %v3249_v31, %v3251_v30 }
 0x10b   : > { %4364 = vmatprep.subr.msk.mxu0 %vm315_vm1, %v3262_v32 }
 0x10c   : > { %4365 = vmatpush1.msk.msra.mxu0 %vm315_vm1, %v3261_v33 }
 0x10d   : > { %v3670_v34 = vpop.permute.xlu1 %3669  ;;  %4366 = vmatmul.mubr.msk.f32.vlgmr.msra.gmra.mrb[2].mxu0 %vm311_vm2, %v4357_v24 }
 0x10e   : > { %v3253_v35 = vpop.permute.xlu0 %3252  ;;  %3782 = vmatprep.mubr.f32.mxu0 %v4588_v0 }
 0x10f   : > { %v3264_v36 = vsel %vm3256_vm9, %v3251_v30, %v3253_v35 }
 0x110   : > { %4367 = vmatprep.subr.msk.mxu1 %vm315_vm1, %v3264_v36 }
 0x111   : > { %4368 = vmatpush1.msk.msra.mxu1 %vm315_vm1, %v3263_v37 }
 0x112   : > { %v3668_v38 = vpop.permute.xlu1 %3667  ;;  %4369 = vmatmul.mubr.msk.f32.vlgmr.msra.gmra.mrb[2].mxu1 %vm311_vm2, %v4357_v24  ;;  %4442 = vmatprep.subr.mxu1 %v4588_v0 }
 0x113   : > { %v3688_v39 = vsel %vm3687_vm10, %v3668_v38, %v3670_v34  ;;  %v3672_v40 = vpop.permute.xlu0 %3671  ;;  %4444 = vmatprep.mubr.msk.f32.mxu1 %vm4596_vm3, %v4588_v0 }
 0x114   : > { %v3689_v41 = vsel %vm3687_vm10, %v3670_v34, %v3672_v40 }
 0x115   : > { %4373 = vmatprep.subr.msk.mxu0 %vm315_vm1, %v3689_v41 }
 0x116   : > { %4374 = vmatpush1.msk.msra.mxu0 %vm315_vm1, %v3688_v39 }
 0x117   : > { %v3678_v43 = vpop.permute.xlu1 %3677  ;;  %4375 = vmatmul.mubr.msk.f32.vlgmr.msra.gmra.mrb[0].mxu0 %vm311_vm2, %v4372_v42 }
 0x118   : > { %v3255_v44 = vpop.permute.xlu0 %3254  ;;  %3924 = vmatprep.mubr.f32.mxu0 %v4588_v0 }
 0x119   : > { %v3265_v45 = vsel %vm3256_vm9, %v3253_v35, %v3255_v44 }
 0x11a   : > { %4443 = vmatpush3.msk.msra.mxu1 %vm315_vm1, %v3265_v45 }
 0x11b   : > { %4445 = vmatmul.mubr.msk.f32.vlgmr.msra.gmra.mrb[10].mxu1 %vm311_vm2, %v4357_v24 }
 0x11c   : > { %v3674_v46 = vpop.permute.xlu1 %3673  ;;  %v3680_v47 = vpop.permute.xlu0 %3679  ;;  %3853 = vmatprep.mubr.f32.mxu1 %v4588_v0 }
 0x11d   : > { %v3693_v48 = vsel %vm3687_vm10, %v3678_v43, %v3680_v47  ;;  %v3690_v53 = vsel %vm3687_vm10, %v3672_v40, %v3674_v46 }
 0x11e   : > { %4379 = vmatprep.subr.msk.mxu0 %vm315_vm1, %v3693_v48 }
 0x121   : > { %v3682_v49 = vpop.permute.xlu1 %3681  ;;  %v3676_v50 = vpop.permute.xlu0 %3675 }
 0x122   : > { %v3691_v51 = vsel %vm3687_vm10, %v3674_v46, %v3676_v50  ;;  %v3692_v52 = vsel %vm3687_vm10, %v3676_v50, %v3678_v43  ;;  %v3694_v58 = vsel %vm3687_vm10, %v3680_v47, %v3682_v49 }
 0x123   : > { %4376 = vmatprep.subr.msk.mxu1 %vm315_vm1, %v3691_v51  ;;  %4380 = vmatpush1.msk.msra.mxu0 %vm315_vm1, %v3692_v52 }
 0x124   : > { %4377 = vmatpush1.msk.msra.mxu1 %vm315_vm1, %v3690_v53  ;;  %4381 = vmatmul.mubr.msk.f32.vlgmr.msra.gmra.mrb[2].mxu0 %vm311_vm2, %v4372_v42 }
 0x125   : > { %v3686_v54 = vpop.permute.xlu1 %3685  ;;  %4378 = vmatmul.mubr.msk.f32.vlgmr.msra.gmra.mrb[0].mxu1 %vm311_vm2, %v4372_v42  ;;  %4447 = vmatprep.subr.mxu0 %v4588_v0 }
 0x126   : > { %v3684_v55 = vpop.permute.xlu0 %3683  ;;  %4449 = vmatprep.mubr.msk.f32.mxu0 %vm4596_vm3, %v4588_v0  ;;  %3995 = vmatprep.mubr.f32.mxu1 %v4588_v0 }
 0x127   : > { %v3695_v56 = vsel %vm3687_vm10, %v3682_v49, %v3684_v55  ;;  %v3696_v57 = vsel %vm3687_vm10, %v3684_v55, %v3686_v54 }
 0x128   : > { %4382 = vmatprep.subr.msk.mxu1 %vm315_vm1, %v3695_v56  ;;  %4448 = vmatpush3.msk.msra.mxu0 %vm315_vm1, %v3696_v57 }
 0x129   : > { %4383 = vmatpush1.msk.msra.mxu1 %vm315_vm1, %v3694_v58  ;;  %4450 = vmatmul.mubr.msk.f32.vlgmr.msra.gmra.mrb[12].mxu0 %vm311_vm2, %v4372_v42 }
 0x12a   : > { %4384 = vmatmul.mubr.msk.f32.vlgmr.msra.gmra.mrb[2].mxu1 %vm311_vm2, %v4372_v42 }
 0x13b   : > { %v4085_v15 = vpop.permute.xlu0 %4084 }
 0x16d   : > { %v684_v59 = vpop.f32.mrb[4].mxu0 }
 0x16e   : > { %v4411_v60 = vpop.f32.mrb[5].mxu0 }
 0x180   : > { %v1060_v61 = vpop.f32.mrb[4].mxu1 }
 0x181   : > { %v1061_v0 = vadd.f32 %v1060_v61, %v684_v59  ;;  %v4416_v62 = vpop.f32.mrb[5].mxu1 }
 0x188   : > { %v1482_v63 = vpop.f32.mrb[6].mxu0 }
 0x189   : > { %v1494_v1 = vadd.f32 %v1482_v63, %v1061_v0  ;;  %v4421_v2 = vpop.f32.mrb[7].mxu0 }
 0x19b   : > { %v1913_v3 = vpop.f32.mrb[6].mxu1 }
 0x19c   : > { %v1925_v4 = vadd.f32 %v1913_v3, %v1494_v1  ;;  %v4426_v5 = vpop.f32.mrb[7].mxu1 }
 0x1a8   : > { %v2344_v6 = vpop.f32.mrb[8].mxu0 }
 0x1a9   : > { %v2356_v7 = vadd.f32 %v2344_v6, %v1925_v4  ;;  %v4431_v8 = vpop.f32.mrb[9].mxu0 }
 0x1c3   : > { %v2775_v9 = vpop.f32.mrb[8].mxu1 }
 0x1c4   : > { %v2787_v10 = vadd.f32 %v2775_v9, %v2356_v7  ;;  %v4436_v11 = vpop.f32.mrb[9].mxu1 }
 0x1cf   : > { %v3206_v12 = vpop.f32.mrb[10].mxu0 }
 0x1d0   : > { %v3218_v13 = vadd.f32 %v3206_v12, %v2787_v10  ;;  %v4441_v14 = vpop.f32.mrb[11].mxu0 }
 0x1ea   : > { %v3784_v16 = vpop.f32.mrb[0].mxu0 }
 0x1eb   : > { %v4087_v17 = vadd.f32 %v4085_v15, %v3784_v16  ;;  %v3786_v18 = vpop.f32.mrb[1].mxu0 }
 0x1ec   : > { %v4088_v19 = vadd.f32 %v4085_v15, %v3786_v18 }
 0x1ed   : > { %4096 = vst [vmem:[%s5103_s28] sm:$0xff] %v4087_v17 }
 0x1ee   : > { %4097 = vst [vmem:[%s5103_s28 + $0x8] sm:$0xff] %v4088_v19  ;;  %v3637_v20 = vpop.f32.mrb[10].mxu1 }
 0x1ef   : > { %v3649_v21 = vadd.f32 %v3637_v20, %v3218_v13  ;;  %v4446_v22 = vpop.f32.mrb[11].mxu1 }
 0x1f7   : > { %v3926_v23 = vpop.f32.mrb[2].mxu0 }
 0x1f8   : > { %v4091_v24 = vadd.f32 %v4085_v15, %v3926_v23  ;;  %v3855_v25 = vpop.f32.mrb[0].mxu1  ;;  %v3928_v26 = vpop.f32.mrb[3].mxu0 }
 0x1f9   : > { %v4089_v27 = vadd.f32 %v4085_v15, %v3855_v25  ;;  %v4092_v28 = vadd.f32 %v4085_v15, %v3928_v26  ;;  %v3857_v29 = vpop.f32.mrb[1].mxu1 }
 0x1fa   : > { %4100 = vst [vmem:[%s5103_s28 + $0x20] sm:$0xff] %v4091_v24  ;;  %v4090_v30 = vadd.f32 %v4085_v15, %v3857_v29 }
 0x1fb   : > { %4098 = vst [vmem:[%s5103_s28 + $0x10] sm:$0xff] %v4089_v27  ;;  %4101 = vst [vmem:[%s5103_s28 + $0x28] sm:$0xff] %v4092_v28 }
 0x1fc   : > { %4099 = vst [vmem:[%s5103_s28 + $0x18] sm:$0xff] %v4090_v30  ;;  %v4068_v31 = vpop.f32.mrb[12].mxu0 }
 0x1fd   : > { %v4080_v32 = vadd.f32 %v4068_v31, %v3649_v21  ;;  %v3997_v33 = vpop.f32.mrb[2].mxu1  ;;  %v4451_v34 = vpop.f32.mrb[13].mxu0 }
 0x1fe   : > { %v4093_v35 = vadd.f32 %v4085_v15, %v3997_v33  ;;  %v3999_v36 = vpop.f32.mrb[3].mxu1 }
 0x1ff   : > { %v4095_v37 = vadd.f32 %v4085_v15, %v4080_v32  ;;  %v4094_v38 = vadd.f32 %v4085_v15, %v3999_v36 }
 0x200   : > { %4102 = vst [vmem:[%s5103_s28 + $0x30] sm:$0xff] %v4093_v35 }
 0x201   : > { %4104 = vst [vmem:[%s5103_s28 + $0x40] sm:$0xff] %v4095_v37  ;;  %4103 = vst [vmem:[%s5103_s28 + $0x38] sm:$0xff] %v4094_v38 }
 0x202 PF: > { %s13_s14 = sadd.s32 1, %s4586_s14   ;;  %s5127_s12 = smov %s4582_s13 }
 0x203   : > { %p10_p5 = scmp.ge.s32.totalorder %s13_s14, 4   ;;  %s5128_s13 = smov %s5130_s15 }
 0x205   :  { %12 = sbr.rel (!%p10_p5) target bundleno = 2 (0x2), region = 76 }

</bundles_post_ra>
